<compile_context>
chip_gen: v5e
topology: v5e:2x2
jax: 0.10.0
libtpu: 0.0.40
codegen_flags: <defaults>
</compile_context>

<pallas_src>
import jax
import jax.numpy as jnp
from jax.experimental import pallas as pl
from jax.experimental.pallas import tpu as pltpu


def _droppath_kernel(scale_ref, x_ref, o_ref):
    # scale_ref: (TB, 1) per-sample scale in x's dtype (0 or 1/keep_prob).
    # x_ref / o_ref: (TB, TM) lane-dense tiles.
    o_ref[...] = x_ref[...] * scale_ref[...]


def _droppath_residual_kernel(scale_ref, x_ref, res_ref, o_ref):
    # Fused: out = residual + x * scale  (saves one full HBM read+write of the
    # activation at the call site for the ubiquitous y = x + drop_path(f(x))).
    o_ref[...] = res_ref[...] + x_ref[...] * scale_ref[...]


_TARGET_BLOCK_BYTES = 4 * 1024 * 1024   # ~4 MiB per x block: per-step overhead (~0.35 us)
                                        # is <5% of DMA time even on v7x's 3.2 TB/s HBM.
_VMEM_LIMIT_BYTES = 32 * 1024 * 1024    # 2 bufs x (in+out+residual) x 4 MiB = 24 MiB max;
                                        # explicit because v5e's scoped default is 16 MiB.
_SUBLANE = {4: 8, 2: 16, 1: 32}         # sublane packing per itemsize (f32 / bf16 / int8-fp8)


def _round_down(v, m):
    return (v // m) * m


def _round_up(v, m):
    return -(-v // m) * m


def _choose_tiles(B, M, itemsize):
    """Pick (TB, TM): lane-dense TM, sublane-aligned TB, blocks <= ~4 MiB.

    Every choice satisfies the (8, 128) rule: each block dim is either a
    multiple of the hardware tile (sublane multiple / 128) or the full dim.
    """
    sub = _SUBLANE.get(itemsize, 8)

    # Feature-axis tile: full dim when it fits the budget at the minimum TB,
    # else the widest multiple of 128 under budget (never collapses to 128
    # unless the budget truly forces it).
    tm_budget = max(128, _round_down(_TARGET_BLOCK_BYTES // (sub * itemsize), 128))
    TM = M if M <= tm_budget else tm_budget

    # Batch-axis tile: full batch when it fits, else sublane-aligned from the
    # remaining budget (so small-M / large-B shapes still reach ~4 MiB blocks,
    # and TB is never an unbounded B that could blow scoped VMEM).
    tb_budget = _TARGET_BLOCK_BYTES // max(1, TM * itemsize)
    TB = B if B <= tb_budget else max(sub, _round_down(tb_budget, sub))

    # v7x has 2 TensorCores per chip: make sure at least one parallel grid axis
    # has >= 2 steps so work can be sharded.  Tiny tensors stay at (1, 1).
    if pl.cdiv(B, TB) == 1 and pl.cdiv(M, TM) == 1:
        if B >= 2 * sub:
            TB = _round_up(pl.cdiv(B, 2), sub)
        elif M > 128:
            TM = max(128, _round_up(pl.cdiv(M, 2), 128))
        elif B > sub:
            TB = sub
    return TB, TM


def drop_path(x, p=0.5, *, key, training=True, residual=None, donate_x=False):
    """DropPath forward. x: (B, ...) — per-sample drop + rescale in training.

    residual: optional array of x's shape; returns residual + drop_path(x) fused.
    donate_x: alias x's HBM buffer for the output (saves the output allocation).
    """
    if residual is not None:
        assert residual.shape == x.shape and residual.dtype == x.dtype

    if not training or p == 0.0:
        # eval mode (or p=0): identity, matches the PyTorch forward's else-branch.
        return x if residual is None else residual + x
    if p >= 1.0:
        # F.dropout(p=1) zeroes everything; avoid 0 * inf NaN in the kernel.
        return jnp.zeros_like(x) if residual is None else residual

    orig_shape = x.shape
    B = orig_shape[0]
    M = 1
    for s in orig_shape[1:]:
        M *= s

    keep_prob = 1.0 - p
    # Same RNG decision as F.dropout on a (B, 1, ..., 1) tensor of ones.
    keep = jax.random.bernoulli(key, keep_prob, (B,))
    # Per-sample scale computed in f32 (mask * 1/(1-p), like PyTorch), cast once.
    scale = jnp.where(keep, jnp.float32(1.0 / keep_prob), jnp.float32(0.0))
    scale = scale.astype(x.dtype).reshape(B, 1)

    # Lane-dense 2-D slab, unpadded: cdiv grid + Pallas-masked ragged edge tiles.
    x2 = x.reshape(B, M)
    itemsize = jnp.dtype(x.dtype).itemsize
    TB, TM = _choose_tiles(B, M, itemsize)
    grid = (pl.cdiv(B, TB), pl.cdiv(M, TM))

    scale_spec = pl.BlockSpec((TB, 1), lambda i, j: (i, 0))
    slab_spec = pl.BlockSpec((TB, TM), lambda i, j: (i, j))

    if residual is None:
        kernel = _droppath_kernel
        operands = (scale, x2)
        in_specs = [scale_spec, slab_spec]
    else:
        kernel = _droppath_residual_kernel
        operands = (scale, x2, residual.reshape(B, M))
        in_specs = [scale_spec, slab_spec, slab_spec]
    io_alias = {1: 0} if donate_x else {}

    out = pl.pallas_call(
        kernel,
        out_shape=jax.ShapeDtypeStruct((B, M), x.dtype),
        grid=grid,
        in_specs=in_specs,
        out_specs=slab_spec,
        input_output_aliases=io_alias,
        compiler_params=pltpu.CompilerParams(
            dimension_semantics=("parallel", "parallel"),
            vmem_limit_bytes=_VMEM_LIMIT_BYTES,
        ),
    )(*operands)

    return out.reshape(orig_shape)


if __name__ == "__main__":
    key = jax.random.PRNGKey(0)
    kx, km, kr = jax.random.split(key, 3)

    B, N, D = 2, 8, 32
    p = 0.5
    x = jax.random.normal(kx, (B, N, D), dtype=jnp.float32)

    # Training mode: per-sample drop + rescale, broadcast-multiply in the kernel.
    y = jax.block_until_ready(drop_path(x, p=p, key=km, training=True))

    # Pure-JAX reference (same RNG decisions).
    keep_ref = jax.random.bernoulli(km, 1.0 - p, (B,))
    scale_ref = jnp.where(keep_ref, 1.0 / (1.0 - p), 0.0).astype(jnp.float32)
    ref = x * scale_ref[:, None, None]
    assert jnp.allclose(y, ref, atol=1e-6), "training-mode mismatch"

    # Eval mode: identity.
    y_eval = jax.block_until_ready(drop_path(x, p=p, key=km, training=False))
    assert jnp.allclose(y_eval, x), "eval-mode mismatch"

    # p = 1.0 edge case: all zeros (matches F.dropout(p=1)).
    y_p1 = jax.block_until_ready(drop_path(x, p=1.0, key=km, training=True))
    assert jnp.allclose(y_p1, jnp.zeros_like(x)), "p=1 mismatch"

    # Fused residual variant: out = residual + drop_path(x).
    r = jax.random.normal(kr, (B, N, D), dtype=jnp.float32)
    y_res = jax.block_until_ready(drop_path(x, p=p, key=km, training=True, residual=r))
    assert jnp.allclose(y_res, r + ref, atol=1e-6), "fused-residual mismatch"

    # Unaligned shape (B not multiple of 8, M=250 not multiple of 128):
    # exercises the cdiv grid with masked edge tiles (no pad / no slice).
    xu = jax.random.normal(kx, (3, 5, 50), dtype=jnp.float32)
    yu = jax.block_until_ready(drop_path(xu, p=p, key=km, training=True))
    keep_u = jax.random.bernoulli(km, 1.0 - p, (3,))
    ref_u = xu * jnp.where(keep_u, 1.0 / (1.0 - p), 0.0).astype(jnp.float32)[:, None, None]
    assert jnp.allclose(yu, ref_u, atol=1e-6), "unaligned-shape mismatch"

    # bf16 path (sublane packing = 16): in-dtype scale multiply.
    xb = x.astype(jnp.bfloat16)
    yb = jax.block_until_ready(drop_path(xb, p=p, key=km, training=True))
    ref_b = xb * scale_ref.astype(jnp.bfloat16)[:, None, None]
    assert jnp.allclose(yb.astype(jnp.float32), ref_b.astype(jnp.float32),
                        atol=1e-2), "bf16 mismatch"

    print("KERNEL_OK")
</pallas_src>

<mosaic_0001>
module attributes {stable_mosaic.version = 11 : i64} {
  func.func @_droppath_kernel(%arg0: i32, %arg1: i32, %arg2: memref<2x1xf32, #tpu.memory_space<vmem>>, %arg3: memref<2x128xf32, #tpu.memory_space<vmem>>, %arg4: memref<2x128xf32, #tpu.memory_space<vmem>>) attributes {dimension_semantics = [#tpu.dimension_semantics<parallel>, #tpu.dimension_semantics<parallel>], iteration_bounds = array<i64: 1, 2>, scalar_prefetch = 0 : i64, scratch_operands = 0 : i64, tpu.core_type = #tpu.core_type<tc>, window_params = [{transform_indices = @transform_0, window_bounds = array<i64: 2, 1>}, {transform_indices = @transform_1, window_bounds = array<i64: 2, 128>}, {transform_indices = @transform_2, window_bounds = array<i64: 2, 128>}]} {
    %c0 = arith.constant 0 : index
    %c0_0 = arith.constant 0 : index
    %0 = vector.load %arg3[%c0, %c0_0] : memref<2x128xf32, #tpu.memory_space<vmem>>, vector<2x128xf32>
    %c0_1 = arith.constant 0 : index
    %c0_2 = arith.constant 0 : index
    %1 = vector.load %arg2[%c0_1, %c0_2] : memref<2x1xf32, #tpu.memory_space<vmem>>, vector<2x1xf32>
    %2 = vector.broadcast %1 : vector<2x1xf32> to vector<2x128xf32>
    %3 = arith.mulf %0, %2 : vector<2x128xf32>
    %c0_3 = arith.constant 0 : index
    %c0_4 = arith.constant 0 : index
    %4 = vector.load %arg4[%c0_3, %c0_4] : memref<2x128xf32, #tpu.memory_space<vmem>>, vector<2x128xf32>
    tpu.vector_store %arg4[%c0_3, %c0_4], %3 {strides = array<i32>} : memref<2x128xf32, #tpu.memory_space<vmem>>, vector<2x128xf32>,
    return
  }
  func.func @transform_0(%arg0: i32, %arg1: i32) -> (i32, i32) {
    %c0_i32 = arith.constant 0 : i32
    %c0_i32_0 = arith.constant 0 : i32
    return %arg0, %c0_i32 : i32, i32
  }
  func.func @transform_1(%arg0: i32, %arg1: i32) -> (i32, i32) {
    %c0_i32 = arith.constant 0 : i32
    return %arg0, %arg1 : i32, i32
  }
  func.func @transform_2(%arg0: i32, %arg1: i32) -> (i32, i32) {
    %c0_i32 = arith.constant 0 : i32
    return %arg0, %arg1 : i32, i32
  }
}

</mosaic_0001>

<bundles_post_ra>
// kernel: tpu_custom_call.1
= control target key start
LH: loop header
LB: loop body
LE: loop exit
PB: predicated region body
PF: predicated region fallthrough
CT: control target
= control target key end

     0   :  { %7 = vsyncpa [#allocation3], 0  ;;  %s651_s0 = inlined_call_operand.vmem [shape: f32[2,1], index: 0, kind: input, shape index: {}]   ;;  %s652_s1 = inlined_call_operand.hbm [shape: f32[2,256], index: 1, kind: input, shape index: {}]   ;;  %s653_s2 = inlined_call_operand.hbm [shape: f32[2,256], index: 2, kind: output, shape index: {}]  }
   0x1   :  { %9 = vsyncpa [#allocation3 + $0x1], 0 }
   0x2   :  { %10 = vsyncpa [#allocation4], 0 }
   0x3   :  { %12 = vsyncpa [#allocation4 + $0x1], 0  ;;  %s528_s9 = smov 0   ;;  %s530_s10 = smov 0  }
   0x4   :  { %s532_s11 = smov 0   ;;  %s534_s12 = smov 0  }
   0x5   :  { %s536_s13 = smov 0   ;;  %s538_s14 = smov 0  }
   0x6 LB: > { %s320_s15 = sadd.s32 4294967295, %s510_s14   ;;  %s321_s16 = sadd.s32 4294967294, %s510_s14   ;;  %s510_s14 = sphi %s538_s14, %s18_s14   ;;  %s506_s13 = sphi %s536_s13, %s662_s13   ;;  %s502_s12 = sphi %s534_s12, %s661_s12   ;;  %s498_s11 = sphi %s532_s11, %s660_s11   ;;  %s494_s10 = sphi %s530_s10, %s659_s10   ;;  %s490_s9 = sphi %s528_s9, %s658_s9  }
   0x7   : > { %s27_s17 = sadd.s32 1, %s506_s13  ;;  %s65_s18 = sadd.s32 1, %s498_s11 }
   0x8   : > { %p28_p0 = scmp.ge.s32.totalorder %s27_s17, 2  ;;  %p72_p1 = scmp.ne.s32.totalorder %s498_s11, %s494_s10 }
   0x9   : > { %p73_p2 = scmp.eq.s32.totalorder %s510_s14, 0  ;;  %p78_p3 = scmp.ne.s32.totalorder %s494_s10, %s490_s9 }
   0xa   : > { %s664_s17 = smov (%p28_p0, %s27_s17), 0  ;;  %p79_p5 = scmp.eq.s32.totalorder %s320_s15, 0 }
   0xb   : > { %p569_p4 = por %p73_p2, %p72_p1  ;;  %s61_s20 = ssub.s32 %s506_s13, %s664_s17 }
   0xc   : > { %p104_p6 = scmp.eq.s32.totalorder %s320_s15, 1  ;;  %p63_p7 = scmp.eq.s32.totalorder %s61_s20, 0 }
   0xd   : > { %p575_p8 = por %p79_p5, %p78_p3  ;;  %p110_p10 = scmp.eq.s32.totalorder %s321_s16, 1 }
   0xe   : > { %p579_p9 = por %p104_p6, %p72_p1  ;;  %p324_p12 = scmp.ge.s32.totalorder %s510_s14, 2 }
   0xf   : > { %s584_s23 = scalar_select %p63_p7, %s498_s11, %s65_s18  }
  0x10   : > { %p586_p11 = por %p110_p10, %p78_p3  ;;  %p346_p13 = scmp.lt.s32.totalorder %s510_s14, 2 }
  0x11   : > { %s137_s25 = sand.u32 1, %s498_s11   ;;  %s326_s27 = sshll.u32 %s506_s13, 1 }
  0x12   : > { %s325_s26 = sshll.u32 %s137_s25, 1  ;;  %s147_s30 = scalar_lea.hbm %s652_s1, %s326_s27 }
  0x13   : > { %s141_s3 = scalar_lea.vmem [#allocation2], %s325_s26  ;;  %s149_s5 = sshll.u32 %s147_s30, 4  ;;  %s150_s5 = int_to_ptr.hbm [resolvable:$true] %s149_s5 }
  0x14   : > { %s151_s4 = sshll.u32 %s141_s3, 4  ;;  %p339_p0 = pnand %p346_p13, %p569_p4  ;;  %s152_s4 = int_to_ptr.vmem [resolvable:$true] %s151_s4 }
  0x15   : > { %p327_p1 = scmp.ge.s32.totalorder %s510_s14, 1  ;;  %p156_p2 = scmp.lt.s32.totalorder %s510_s14, 3 }
  0x16   : > { %s138_s6 = scalar_lea.sflag [#allocation3], %s137_s25 }
  0x17   : > { %341 = dma.hbm_to_vmem [thread:$0]  (!%p339_p0), %s150_s5, 32, %s152_s4, %s138_s6  }
  0x18   : > { %p157_p3 = pnand %p327_p1, %p156_p2 }
  0x19   : > { %s602_s7 = sand.u32 (!%p157_p3), 1, %s494_s10  }
  0x1a   : > { %160 = sbr.rel (%p157_p3) target bundleno = 154 (0x9a), region = 28  ;;  %s328_s8 = sshll.u32 (!%p157_p3), %s602_s7, 1 }
  0x1b   : > { %s163_s15 = scalar_lea.sflag (!%p157_p3), [#allocation3], %s602_s7  ;;  %s166_s16 = scalar_lea.vmem (!%p157_p3), [#allocation2], %s328_s8 }
  0x1f   : > { %481 = dma.done.wait (%p575_p8), %s163_s15, 32  }
  0x20   : > { %483 = vsyncadd (%p575_p8), %s163_s15, 4294967264  ;;  %v512_v0 = vmov 0   ;;  %v197_v1 = vld [vmem:[%s651_s0] sm:$0x3]  ;;  %s331_s20 = sshll.u32 %s502_s12, 1  ;;  %s191_s28 = scalar_lea.vmem [#allocation5], %s328_s8 }
  0x21   : > { %397 = vset.pattern.permute.xlu0 %v512_v0  ;;  %s218_s27 = scalar_lea.hbm %s653_s2, %s331_s20  ;;  %v196_v2 = vld [vmem:[%s166_s16] sm:$0x3]  ;;  %s220_s29 = sshll.u32 %s191_s28, 4  ;;  %s221_s29 = int_to_ptr.vmem [resolvable:$true] %s220_s29 }
  0x22   : > { %200 = vperm.xlu0 %397, %v197_v1   ;;  %s222_s21 = sshll.u32 %s218_s27, 4  ;;  %s206_s30 = scalar_lea.sflag [#allocation4], %s602_s7  ;;  %s223_s21 = int_to_ptr.hbm [resolvable:$true] %s222_s21 }
  0x23   : > { %s442_s3 = sshra.s32 %s223_s21, 4  ;;  %s448_s6 = scalar_lea.hbm %s653_s2, 4  ;;  %s443_s3 = int_to_ptr.hbm [resolvable:$true] %s442_s3 }
  0x24   : > { %s444_s4 = scalar_lea.hbm %s443_s3, 2  ;;  %p449_p7 = scmp.lt.s32.totalorder %s443_s3, %s653_s2 }
  0x25   : > { %p445_p4 = scmp.ne.s32.totalorder %s443_s3, %s444_s4  ;;  %p450_p8 = scmp.lt.s32.totalorder %s448_s6, %s444_s4 }
  0x27   : > { %p446_p5 = pnand %p445_p4, %p579_p9  ;;  %p451_p10 = por %p450_p8, %p449_p7 }
  0x29   : > { %p447_p6 = pneg %p446_p5 }
  0x2b   : > { %p452_p13 = pnand %p451_p10, %p447_p6 }
  0x94   : > { %v201_v3 = vpop.permute.xlu0 %200 }
  0x95   : > { %v203_v4 = vmul.f32 %v201_v3, %v196_v2 }
  0x97   : > { %204 = vst [vmem:[%s191_s28] sm:$0x3] %v203_v4 }
  0x98   : > { %455 = shalt.err (!%p452_p13)
}
  0x99   : > { %336 = dma.vmem_to_hbm [thread:$0]  (%p579_p9), %s221_s29, 32, %s223_s21, %s206_s30  }
  0x9a PF: > { %s234_s7 = sand.u32 1, %s490_s9   ;;  %p343_p0 = pnand %p324_p12, %p586_p11 }
  0x9b   : > { %s235_s16 = scalar_lea.sflag [#allocation4], %s234_s7 }
  0x9c   : > { %p344_p1 = pneg %p343_p0 }
  0x9e   : > { %485 = dma.done.wait (%p344_p1), %s235_s16, 32  }
  0x9f   : > { %487 = vsyncadd (%p344_p1), %s235_s16, 4294967264  ;;  %s18_s14 = sadd.s32 1, %s510_s14   ;;  %s658_s9 = smov %s494_s10 }
  0xa0   : > { %p15_p2 = scmp.ge.s32.totalorder %s18_s14, 4   ;;  %s659_s10 = smov %s498_s11 }
  0xa1   : > { %s660_s11 = smov %s584_s23  ;;  %s661_s12 = smov %s506_s13 }
  0xa2   : > { %s662_s13 = smov %s664_s17  ;;  %17 = sbr.rel (!%p15_p2) target bundleno = 6 (0x6), region = 76 }
  0xa7   :  { %241 = vsyncpa [#allocation3], 1 }
  0xa8   :  { %243 = vsyncpa [#allocation3 + $0x1], 1 }
  0xa9   :  { %244 = vsyncpa [#allocation4], 1 }
  0xaa   :  { %246 = vsyncpa [#allocation4 + $0x1], 1 }

</bundles_post_ra>
